<compile_context>
chip_gen: v5e
topology: v5e:2x2
jax: 0.10.0
libtpu: 0.0.40
codegen_flags: <defaults>
</compile_context>

<pallas_src>
import math
from functools import partial

import jax
import jax.numpy as jnp
import numpy as np
from jax.experimental import pallas as pl
from jax.experimental.pallas import tpu as pltpu


def _taylor_softmax_kernel(x_ref, o_ref, *, n: int):
    """Shared by the 3D (tB, C, tS) and 4D (tB, C, sS, 128) layouts.

    The softmax axis C is always axis 1 of the block and always fully resident,
    so clipped (OOB) rows/lanes of tail blocks never contaminate valid outputs.
    """
    x = x_ref[...].astype(jnp.float32)  # no-op for f32 inputs

    # Horner evaluation of fn = sum_{i=0..n} x^i / i!  (n is a small static int)
    fn = jnp.full_like(x, 1.0 / math.factorial(n))
    for i in range(n - 1, -1, -1):
        fn = fn * x + (1.0 / math.factorial(i))

    denom = jnp.sum(fn, axis=1, keepdims=True)  # reduce over the softmax axis
    o_ref[...] = (fn * pl.reciprocal(denom, approx=False)).astype(o_ref.dtype)


def _gen_budgets(itemsize: int):
    """Per-TPU-generation (nominal tile bytes, vmem_limit_bytes or None)."""
    kind = ""
    try:
        kind = jax.devices()[0].device_kind.lower()
    except Exception:
        pass
    if "v7" in kind or "7x" in kind:
        target, vmem = 3 << 20, 48 << 20   # 64 MiB physical VMEM per TC
    elif "v6" in kind:
        target, vmem = 6 << 20, 64 << 20   # 128 MiB physical, 32 MiB scoped default
    elif "v5" in kind:
        target, vmem = 2 << 20, 28 << 20   # 16 MiB scoped default is the tight one
    else:
        target, vmem = 2 << 20, None       # unknown gen: keep the scoped default
    if itemsize < 4:
        # The kernel upcasts to f32 in VMEM; shrink the nominal tile so the f32
        # temporaries (x, fn) do not blow the budget.
        target = max(1 << 20, target * itemsize // 4)
    return target, vmem


def _run(x3, *, n: int, target_tile_bytes: int, vmem_limit_bytes):
    """Taylor softmax over axis 1 of a (P, C, L) array."""
    P, C, L = (int(d) for d in x3.shape)
    itemsize = jnp.dtype(x3.dtype).itemsize

    # 4D layout only when one minimal stripe (full C x 8 sublanes x 128 lanes)
    # fits the nominal tile; otherwise fall back to the 3D layout whose minimal
    # tile (full C x 128 lanes) is 8x smaller for huge C.
    use_4d = (L % 128 == 0) and (C * 8 * 128 * itemsize <= target_tile_bytes)

    if use_4d:
        L128 = L // 128
        x_in = x3.reshape(P, C, L128, 128)            # memory-order preserving: free
        s_cap = max(1, target_tile_bytes // (C * 128 * itemsize))
        if L128 <= s_cap:
            sS = L128                                 # full extent: always legal
        else:
            sS = max(8, (s_cap // 8) * 8)             # 8-multiple; masked sublane tail
        tB = int(max(1, min(P, target_tile_bytes // (C * sS * 128 * itemsize))))
        # Guarantee >= 2 grid steps when possible so both v7x TensorCores get work.
        if pl.cdiv(P, tB) * pl.cdiv(L128, sS) < 2:
            if P >= 2:
                tB = -(-P // 2)
            elif L128 > 8:
                half = ((((L128 + 1) // 2) + 7) // 8) * 8
                if half < L128:
                    sS = half
        block = (tB, C, sS, 128)
        grid = (pl.cdiv(P, tB), pl.cdiv(L128, sS))
        index_map = lambda i, j: (i, 0, j, 0)
        out_shape = jax.ShapeDtypeStruct((P, C, L128, 128), x3.dtype)
    else:
        x_in = x3
        if L >= 256:
            lane_cap = max(128, (target_tile_bytes // max(1, C * itemsize)) // 128 * 128)
            tS = min((L // 128) * 128, lane_cap)      # 128-multiple; masked lane tail
        else:
            tS = L                                    # full extent: always legal
        tB = int(max(1, min(P, target_tile_bytes // max(1, C * tS * itemsize))))
        if pl.cdiv(P, tB) * pl.cdiv(L, tS) < 2:
            if P >= 2:
                tB = -(-P // 2)
            elif L >= 256 and tS >= 256:
                tS = max(128, ((tS // 2) // 128) * 128)
        block = (tB, C, tS)
        grid = (pl.cdiv(P, tB), pl.cdiv(L, tS))
        index_map = lambda i, j: (i, 0, j)
        out_shape = jax.ShapeDtypeStruct((P, C, L), x3.dtype)

    # Loud guard for very large softmax axes: C is always fully resident, so the
    # per-step footprint (2x double-buffered in + 2x out at input dtype, plus ~3
    # f32 temporaries from the in-kernel upcast) must fit scoped VMEM.
    block_elems = int(np.prod(block))
    est_vmem = block_elems * (4 * itemsize + 3 * 4)
    guard = vmem_limit_bytes if vmem_limit_bytes is not None else (32 << 20)
    if est_vmem > guard:
        # TODO(synk): add a two-pass C-split path (accumulate the denominator on an
        # "arbitrary" grid axis + scratch, then normalize) for huge softmax axes.
        raise ValueError(
            "TaylorSoftmax: softmax axis too large for the single-pass kernel "
            f"(block {block} needs ~{est_vmem >> 20} MiB VMEM, budget "
            f"{guard >> 20} MiB).")

    cp_kwargs = dict(dimension_semantics=("parallel", "parallel"))
    if vmem_limit_bytes is not None:
        cp_kwargs["vmem_limit_bytes"] = int(vmem_limit_bytes)

    # NOTE: pl.Buffered(3) on the input was considered; left at the default depth
    # of 2 since exposed-DMA could not be confirmed with a trace here.
    out = pl.pallas_call(
        partial(_taylor_softmax_kernel, n=n),
        out_shape=out_shape,
        grid_spec=pltpu.PrefetchScalarGridSpec(
            num_scalar_prefetch=0,
            grid=grid,
            in_specs=[pl.BlockSpec(block, index_map)],
            out_specs=pl.BlockSpec(block, index_map),
        ),
        compiler_params=pltpu.CompilerParams(**cp_kwargs),
    )(x_in)
    return out.reshape(P, C, L)


def taylor_softmax(x, dim: int = 1, n: int = 2, *,
                   target_tile_bytes=None, vmem_limit_bytes=None):
    assert n % 2 == 0
    ndim = x.ndim
    dim = dim % ndim

    pre = int(np.prod(x.shape[:dim])) if dim > 0 else 1
    C = int(x.shape[dim])
    S = int(np.prod(x.shape[dim + 1:])) if dim + 1 < ndim else 1

    itemsize = jnp.dtype(x.dtype).itemsize
    auto_target, auto_vmem = _gen_budgets(itemsize)
    if target_tile_bytes is None:
        target_tile_bytes = auto_target
    if vmem_limit_bytes is None:
        vmem_limit_bytes = auto_vmem

    x3 = x.reshape(pre, C, S)  # memory-order preserving: free in HBM

    if S < 128 and pre >= 256:
        # Tiny trailing extent: lanes would be <= S/128 utilized with masked
        # stores.  Put the large `pre` axis on lanes instead (one extra HBM
        # transpose pass, lane-dense tiles afterwards).
        x3t = jnp.transpose(x3, (2, 1, 0))
        out3 = _run(x3t, n=n, target_tile_bytes=target_tile_bytes,
                    vmem_limit_bytes=vmem_limit_bytes)
        out3 = jnp.transpose(out3, (2, 1, 0))
    else:
        out3 = _run(x3, n=n, target_tile_bytes=target_tile_bytes,
                    vmem_limit_bytes=vmem_limit_bytes)

    return out3.reshape(x.shape)


def _taylor_softmax_ref(x, dim=1, n=2):
    """Pure-JAX reference mirroring the PyTorch forward exactly."""
    fn = jnp.ones_like(x)
    denor = 1.0
    for i in range(1, n + 1):
        denor *= i
        fn = fn + jnp.power(x, i) / denor
    return fn / jnp.sum(fn, axis=dim, keepdims=True)


if __name__ == "__main__":
    def _check(x, dim=1, n=2, **kw):
        out = jax.block_until_ready(taylor_softmax(x, dim=dim, n=n, **kw))
        ref = _taylor_softmax_ref(x, dim=dim, n=n)
        assert out.shape == x.shape and out.dtype == x.dtype
        np.testing.assert_allclose(np.asarray(out), np.asarray(ref),
                                   rtol=1e-5, atol=1e-5)

    key = jax.random.PRNGKey(0)
    k1, k2, k3, k4, k5 = jax.random.split(key, 5)

    # 1) Module-default path: NCHW, softmax over channels (C=4), n=2 -> 4D layout.
    _check(jax.random.normal(k1, (2, 4, 16, 16), dtype=jnp.float32))

    # 2) Same input with n=4 (higher-order Taylor polynomial).
    _check(jax.random.normal(k1, (2, 4, 16, 16), dtype=jnp.float32), n=4)

    # 3) Ragged tiny spatial: 3D layout, full-extent lane block + leading tail block.
    _check(jax.random.normal(k2, (3, 8, 5, 7), dtype=jnp.float32))

    # 4) Ragged spatial >= 256: 3D layout, 128-multiple lane tile + masked lane tail.
    _check(jax.random.normal(k3, (2, 4, 300), dtype=jnp.float32))

    # 5) 4D layout with a masked sublane tail (force a small tile budget).
    _check(jax.random.normal(k4, (2, 4, 17 * 128), dtype=jnp.float32),
           target_tile_bytes=16 * 1024)

    # 6) Tiny trailing extent, large leading extent: transposed lane-dense fallback.
    _check(jax.random.normal(k5, (256, 4, 6), dtype=jnp.float32))

    print("KERNEL_OK")
</pallas_src>

<mosaic_0001>
module attributes {stable_mosaic.version = 11 : i64} {
  func.func @_taylor_softmax_kernel(%arg0: i32, %arg1: i32, %arg2: memref<1x4x2x128xf32, #tpu.memory_space<vmem>>, %arg3: memref<1x4x2x128xf32, #tpu.memory_space<vmem>>) attributes {dimension_semantics = [#tpu.dimension_semantics<parallel>, #tpu.dimension_semantics<parallel>], iteration_bounds = array<i64: 2, 1>, scalar_prefetch = 0 : i64, scratch_operands = 0 : i64, tpu.core_type = #tpu.core_type<tc>, window_params = [{transform_indices = @transform_0, window_bounds = array<i64: 1, 4, 2, 128>}, {transform_indices = @transform_1, window_bounds = array<i64: 1, 4, 2, 128>}]} {
    %c0 = arith.constant 0 : index
    %c0_0 = arith.constant 0 : index
    %c0_1 = arith.constant 0 : index
    %c0_2 = arith.constant 0 : index
    %0 = vector.load %arg2[%c0, %c0_0, %c0_1, %c0_2] : memref<1x4x2x128xf32, #tpu.memory_space<vmem>>, vector<1x4x2x128xf32>
    %cst = arith.constant 5.000000e-01 : f32
    %1 = vector.broadcast %cst : f32 to vector<1x4x2x128xf32>
    %2 = arith.mulf %1, %0 : vector<1x4x2x128xf32>
    %cst_3 = arith.constant 1.000000e+00 : f32
    %3 = vector.broadcast %cst_3 : f32 to vector<1x4x2x128xf32>
    %4 = arith.addf %2, %3 : vector<1x4x2x128xf32>
    %5 = arith.mulf %4, %0 : vector<1x4x2x128xf32>
    %cst_4 = arith.constant 1.000000e+00 : f32
    %6 = vector.broadcast %cst_4 : f32 to vector<1x4x2x128xf32>
    %7 = arith.addf %5, %6 : vector<1x4x2x128xf32>
    %cst_5 = arith.constant dense<0.000000e+00> : vector<1x2x128xf32>
    %8 = vector.multi_reduction <add>, %7, %cst_5 [1] : vector<1x4x2x128xf32> to vector<1x2x128xf32>
    %9 = vector.shape_cast %8 : vector<1x2x128xf32> to vector<1x1x2x128xf32>
    %10 = tpu.reciprocal %9 : vector<1x1x2x128xf32> -> vector<1x1x2x128xf32>
    %11 = vector.broadcast %10 : vector<1x1x2x128xf32> to vector<1x4x2x128xf32>
    %12 = arith.mulf %7, %11 : vector<1x4x2x128xf32>
    %c0_6 = arith.constant 0 : index
    %c0_7 = arith.constant 0 : index
    %c0_8 = arith.constant 0 : index
    %c0_9 = arith.constant 0 : index
    %13 = vector.load %arg3[%c0_6, %c0_7, %c0_8, %c0_9] : memref<1x4x2x128xf32, #tpu.memory_space<vmem>>, vector<1x4x2x128xf32>
    tpu.vector_store %arg3[%c0_6, %c0_7, %c0_8, %c0_9], %12 {strides = array<i32>} : memref<1x4x2x128xf32, #tpu.memory_space<vmem>>, vector<1x4x2x128xf32>,
    return
  }
  func.func @transform_0(%arg0: i32, %arg1: i32) -> (i32, i32, i32, i32) {
    %c0_i32 = arith.constant 0 : i32
    %c0_i32_0 = arith.constant 0 : i32
    %c0_i32_1 = arith.constant 0 : i32
    return %arg0, %c0_i32, %arg1, %c0_i32_0 : i32, i32, i32, i32
  }
  func.func @transform_1(%arg0: i32, %arg1: i32) -> (i32, i32, i32, i32) {
    %c0_i32 = arith.constant 0 : i32
    %c0_i32_0 = arith.constant 0 : i32
    %c0_i32_1 = arith.constant 0 : i32
    return %arg0, %c0_i32, %arg1, %c0_i32_0 : i32, i32, i32, i32
  }
}

</mosaic_0001>

<bundles_post_ra>
// kernel: tpu_custom_call.1
= control target key start
LH: loop header
LB: loop body
LE: loop exit
PB: predicated region body
PF: predicated region fallthrough
CT: control target
= control target key end

     0   :  { %6 = vsyncpa [#allocation3], 0  ;;  %s643_s0 = inlined_call_operand.hbm [shape: f32[2,4,2,128], index: 0, kind: input, shape index: {}]   ;;  %s644_s1 = inlined_call_operand.hbm [shape: f32[2,4,2,128], index: 1, kind: output, shape index: {}]  }
   0x1   :  { %8 = vsyncpa [#allocation3 + $0x1], 0 }
   0x2   :  { %9 = vsyncpa [#allocation4], 0 }
   0x3   :  { %11 = vsyncpa [#allocation4 + $0x1], 0  ;;  %s519_s6 = smov 0   ;;  %s521_s7 = smov 0  }
   0x4   :  { %s523_s8 = smov 0   ;;  %s525_s9 = smov 0  }
   0x5   :  { %s527_s10 = smov 0   ;;  %s529_s11 = smov 0  }
   0x6 LB: > { %s306_s12 = sadd.s32 4294967295, %s503_s11   ;;  %s307_s13 = sadd.s32 4294967294, %s503_s11   ;;  %s503_s11 = sphi %s529_s11, %s17_s11   ;;  %s499_s10 = sphi %s527_s10, %s653_s10   ;;  %s495_s9 = sphi %s525_s9, %s652_s9   ;;  %s491_s8 = sphi %s523_s8, %s651_s8   ;;  %s487_s7 = sphi %s521_s7, %s650_s7   ;;  %s483_s6 = sphi %s519_s6, %s649_s6  }
   0x7   : > { %s29_s14 = sadd.s32 1, %s499_s10  ;;  %s38_s15 = sadd.s32 1, %s491_s8 }
   0x8   : > { %p31_p0 = scmp.ge.s32.totalorder %s29_s14, 2  ;;  %p45_p1 = scmp.ne.s32.totalorder %s491_s8, %s487_s7 }
   0x9   : > { %p46_p2 = scmp.eq.s32.totalorder %s503_s11, 0  ;;  %p51_p3 = scmp.ne.s32.totalorder %s487_s7, %s483_s6 }
   0xa   : > { %s655_s14 = smov (%p31_p0, %s29_s14), 0  ;;  %p52_p5 = scmp.eq.s32.totalorder %s306_s12, 0 }
   0xb   : > { %p560_p4 = por %p46_p2, %p45_p1  ;;  %s33_s17 = ssub.s32 %s499_s10, %s655_s14 }
   0xc   : > { %p77_p6 = scmp.eq.s32.totalorder %s306_s12, 1  ;;  %p36_p7 = scmp.eq.s32.totalorder %s33_s17, 0 }
   0xd   : > { %p566_p8 = por %p52_p5, %p51_p3  ;;  %p83_p10 = scmp.eq.s32.totalorder %s307_s13, 1 }
   0xe   : > { %p570_p9 = por %p77_p6, %p45_p1  ;;  %p309_p12 = scmp.ge.s32.totalorder %s503_s11, 2 }
   0xf   : > { %s575_s20 = scalar_select %p36_p7, %s491_s8, %s38_s15  }
  0x10   : > { %p577_p11 = por %p83_p10, %p51_p3  ;;  %p335_p13 = scmp.lt.s32.totalorder %s503_s11, 2 }
  0x11   : > { %s103_s22 = sand.u32 1, %s491_s8   ;;  %s321_s24 = sshll.u32 %s499_s10, 3 }
  0x12   : > { %s310_s23 = sshll.u32 %s103_s22, 3  ;;  %s113_s27 = scalar_lea.hbm %s643_s0, %s321_s24 }
  0x13   : > { %s107_s28 = scalar_lea.vmem [#allocation2], %s310_s23  ;;  %s114_s30 = sshll.u32 %s113_s27, 4  ;;  %s115_s30 = int_to_ptr.hbm [resolvable:$true] %s114_s30 }
  0x14   : > { %s116_s29 = sshll.u32 %s107_s28, 4  ;;  %p328_p0 = pnand %p335_p13, %p560_p4  ;;  %s117_s29 = int_to_ptr.vmem [resolvable:$true] %s116_s29 }
  0x15   : > { %p313_p1 = scmp.ge.s32.totalorder %s503_s11, 1  ;;  %s104_s2 = scalar_lea.sflag [#allocation3], %s103_s22 }
  0x16   : > { %s505_s3 = smov 32   ;;  %s506_s4 = smov 2  }
  0x17   : > { %330 = dma.hbm_to_vmem [thread:$0]  (!%p328_p0), %s115_s30, 128, %s117_s29, %s104_s2, %s505_s3, %s505_s3, %s506_s4  }
  0x18   : > { %p124_p2 = scmp.lt.s32.totalorder %s503_s11, 3 }
  0x1a   : > { %p125_p3 = pnand %p313_p1, %p124_p2 }
  0x1b   : > { %s593_s5 = sand.u32 (!%p125_p3), 1, %s487_s7  }
  0x1c   : > { %128 = sbr.rel (%p125_p3) target bundleno = 76 (0x4c), region = 24  ;;  %s314_s12 = sshll.u32 (!%p125_p3), %s593_s5, 3 }
  0x1d   : > { %s131_s13 = scalar_lea.sflag (!%p125_p3), [#allocation3], %s593_s5  ;;  %s134_s15 = scalar_lea.vmem (!%p125_p3), [#allocation2], %s314_s12 }
  0x21   : > { %474 = dma.done.wait (%p566_p8), %s131_s13, 128  }
  0x22   : > { %476 = vsyncadd (%p566_p8), %s131_s13, 4294967168  ;;  %v154_v0 = vld [vmem:[%s134_s15] sm:$0x3]  ;;  %v155_v1 = vld [vmem:[%s134_s15 + $0x2] sm:$0x3]  ;;  %vm174_vm0 = vcmask 1041408  }
  0x23   : > { %v156_v2 = vld [vmem:[%s134_s15 + $0x4] sm:$0x3]  ;;  %v157_v3 = vld [vmem:[%s134_s15 + $0x6] sm:$0x3]  ;;  %v158_v4 = vmul.f32 0.5, %v154_v0  ;;  %v159_v5 = vmul.f32 0.5, %v155_v1 }
  0x24   : > { %v160_v6 = vmul.f32 0.5, %v156_v2  ;;  %v161_v7 = vmul.f32 0.5, %v157_v3  ;;  %s322_s16 = sshll.u32 %s495_s9, 3  ;;  %s153_s23 = scalar_lea.vmem [#allocation5], %s314_s12 }
  0x25   : > { %v162_v8 = vadd.f32 1.0, %v158_v4  ;;  %v163_v9 = vadd.f32 1.0, %v159_v5  ;;  %s217_s22 = scalar_lea.hbm %s644_s1, %s322_s16  ;;  %s218_s24 = sshll.u32 %s153_s23, 4  ;;  %s219_s24 = int_to_ptr.vmem [resolvable:$true] %s218_s24 }
  0x26   : > { %v164_v10 = vadd.f32 1.0, %v160_v6  ;;  %v165_v11 = vadd.f32 1.0, %v161_v7  ;;  %s220_s25 = sshll.u32 %s217_s22, 4  ;;  %s205_s9 = scalar_lea.sflag [#allocation4], %s593_s5  ;;  %s221_s25 = int_to_ptr.hbm [resolvable:$true] %s220_s25 }
  0x27   : > { %v166_v12 = vmul.f32 %v162_v8, %v154_v0  ;;  %v167_v13 = vmul.f32 %v163_v9, %v155_v1  ;;  %s435_s26 = sshra.s32 %s221_s25, 4  ;;  %s441_s30 = scalar_lea.hbm %s644_s1, 16  ;;  %s436_s26 = int_to_ptr.hbm [resolvable:$true] %s435_s26 }
  0x28   : > { %v168_v14 = vmul.f32 %v164_v10, %v156_v2  ;;  %v169_v15 = vmul.f32 %v165_v11, %v157_v3  ;;  %s437_s27 = scalar_lea.hbm %s436_s26, 8  ;;  %p442_p7 = scmp.lt.s32.totalorder %s436_s26, %s644_s1 }
  0x29   : > { %v170_v16 = vadd.f32 1.0, %v166_v12  ;;  %v171_v17 = vadd.f32 1.0, %v167_v13  ;;  %p438_p4 = scmp.ne.s32.totalorder %s436_s26, %s437_s27  ;;  %p443_p8 = scmp.lt.s32.totalorder %s441_s30, %s437_s27 }
  0x2a   : > { %v172_v18 = vadd.f32 1.0, %v168_v14  ;;  %v173_v19 = vadd.f32 1.0, %v169_v15 }
  0x2b   : > { %v175_v20 = vsel %vm174_vm0, %v170_v16, 0.0  ;;  %v176_v21 = vsel %vm174_vm0, %v171_v17, 0.0  ;;  %p439_p5 = pnand %p438_p4, %p570_p9  ;;  %p444_p10 = por %p443_p8, %p442_p7 }
  0x2c   : > { %v178_v22 = vsel %vm174_vm0, %v172_v18, 0.0  ;;  %v177_v23 = vadd.f32 %v176_v21, %v175_v20  ;;  %v180_v24 = vsel %vm174_vm0, %v173_v19, 0.0 }
  0x2d   : > { %p440_p6 = pneg %p439_p5 }
  0x2e   : > { %v179_v25 = vadd.f32 %v178_v22, %v177_v23 }
  0x2f   : > { %p445_p13 = pnand %p444_p10, %p440_p6 }
  0x30   : > { %v181_v26 = vadd.f32 %v180_v24, %v179_v25 }
  0x32   : > { %389 = vrcp.f32 %v181_v26  ;;  %v193_v29 = vand.u32 2147483648, %v181_v26  ;;  %vm187_vm1 = vweird.f32 %v181_v26  ;;  %v191_v31 = vand.u32 2147483647, %v181_v26 }
  0x34   : > { %v194_v33 = vor.u32 1.1754944e-38, %v193_v29  ;;  %vm192_vm4 = vcmp.eq.f32.partialorder %v191_v31, 8.507059e+37 }
  0x38   : > { %v390_v27 = vpop.eup %389 }
  0x39   : > { %v183_v28 = vmul.f32 %v390_v27, %v181_v26  ;;  %vm188_vm2 = vweird.f32 %v390_v27 }
  0x3a   : > { %vm189_vm3 = vmor %vm187_vm1, %vm188_vm2 }
  0x3b   : > { %v184_v30 = vsub.f32 1.0, %v183_v28 }
  0x3d   : > { %v185_v32 = vmul.f32 %v390_v27, %v184_v30 }
  0x3f   : > { %v186_v34 = vadd.f32 %v390_v27, %v185_v32 }
  0x41   : > { %v190_v35 = vsel %vm189_vm3, %v390_v27, %v186_v34 }
  0x42   : > { %v195_v36 = vsel %vm192_vm4, %v194_v33, %v190_v35 }
  0x43   : > { %v196_v37 = vmul.f32 %v195_v36, %v170_v16  ;;  %v197_v38 = vmul.f32 %v195_v36, %v171_v17  ;;  %v198_v39 = vmul.f32 %v195_v36, %v172_v18  ;;  %v199_v40 = vmul.f32 %v195_v36, %v173_v19 }
  0x45   : > { %200 = vst [vmem:[%s153_s23] sm:$0x3] %v196_v37 }
  0x46   : > { %201 = vst [vmem:[%s153_s23 + $0x2] sm:$0x3] %v197_v38 }
  0x47   : > { %202 = vst [vmem:[%s153_s23 + $0x4] sm:$0x3] %v198_v39 }
  0x48   : > { %203 = vst [vmem:[%s153_s23 + $0x6] sm:$0x3] %v199_v40 }
  0x49   : > { %448 = shalt.err (!%p445_p13)
}
  0x4a   : > { %s507_s4 = smov 32   ;;  %s508_s5 = smov 2  }
  0x4b   : > { %325 = dma.vmem_to_hbm [thread:$0]  (%p570_p9), %s219_s24, 128, %s221_s25, %s205_s9, %s507_s4, %s507_s4, %s508_s5  }
  0x4c PF: > { %s235_s12 = sand.u32 1, %s483_s6   ;;  %p332_p0 = pnand %p309_p12, %p577_p11 }
  0x4d   : > { %s236_s13 = scalar_lea.sflag [#allocation4], %s235_s12 }
  0x4e   : > { %p333_p1 = pneg %p332_p0 }
  0x50   : > { %478 = dma.done.wait (%p333_p1), %s236_s13, 128  }
  0x51   : > { %480 = vsyncadd (%p333_p1), %s236_s13, 4294967168  ;;  %s17_s11 = sadd.s32 1, %s503_s11   ;;  %s649_s6 = smov %s487_s7 }
  0x52   : > { %p14_p2 = scmp.ge.s32.totalorder %s17_s11, 4   ;;  %s650_s7 = smov %s491_s8 }
  0x53   : > { %s651_s8 = smov %s575_s20  ;;  %s652_s9 = smov %s499_s10 }
  0x54   : > { %s653_s10 = smov %s655_s14  ;;  %16 = sbr.rel (!%p14_p2) target bundleno = 6 (0x6), region = 69 }
  0x59   :  { %242 = vsyncpa [#allocation3], 1 }
  0x5a   :  { %244 = vsyncpa [#allocation3 + $0x1], 1 }
  0x5b   :  { %245 = vsyncpa [#allocation4], 1 }
  0x5c   :  { %247 = vsyncpa [#allocation4 + $0x1], 1 }

</bundles_post_ra>
